<compile_context>
chip_gen: v7x
topology: tpu7x:2x2x1
jax: 0.10.0
libtpu: 0.0.40
codegen_flags: <defaults>
</compile_context>

<pallas_src>
import functools

import jax
import jax.numpy as jnp
from jax.experimental import pallas as pl
from jax.experimental.pallas import tpu as pltpu

_LANES = 128
_TWO_PI = 6.283185307179586
_TILE_CAP_HALF_ROWS = 2048   # output block = (4096, 128) f32 = 2 MiB
_CHUNK_ROWS = 256            # Box-Muller sub-chunk (bounds VMEM temporaries)


def _cdiv(a: int, b: int) -> int:
    return -(-a // b)


def _lowbias32(x):
    """32-bit integer finalizer (lowbias32); uint32 in -> uint32 out."""
    x = x ^ (x >> 16)
    x = x * jnp.uint32(0x7FEB352D)
    x = x ^ (x >> 15)
    x = x * jnp.uint32(0x846CA68B)
    x = x ^ (x >> 16)
    return x


def _bits_to_unit_float(bits, ensure_nonzero):
    """uint32 random bits -> uniform float32 in [0,1) via exponent bitcast."""
    mant = bits >> 9
    if ensure_nonzero:
        mant = mant | jnp.uint32(1)  # keep u strictly > 0 so log(u) is finite
    f = jax.lax.bitcast_convert_type(mant | jnp.uint32(0x3F800000), jnp.float32)
    return f - jnp.float32(1.0)


def _randn_kernel(seed_ref, out_ref, *, half, chunk, n_chunks, use_hw_prng):
    """Fill a lane-dense (2*half, 128) block with N(0,1) samples (Box-Muller)."""
    lanes = out_ref.shape[1]
    blk = pl.program_id(0)

    if use_hw_prng:
        # Distinct hardware-PRNG stream per grid block; bits are nearly free,
        # relieving the VALU slot on v6e/v7x.
        pltpu.prng_seed(seed_ref[0], blk)
        local = None
        scal_base = None
    else:
        # Counter-based fallback (interpret / non-TPU).  The chunk-invariant
        # flat index is hoisted out of the per-chunk loop; per chunk we only
        # add a scalar offset.
        row = jax.lax.broadcasted_iota(jnp.int32, (chunk, lanes), 0)
        col = jax.lax.broadcasted_iota(jnp.int32, (chunk, lanes), 1)
        local = (row << 7) | col  # lanes == 128 == 2**7
        seed_off = seed_ref[0] * jnp.int32(-1640531527)  # seed * golden ratio
        scal_base = (blk * half) * lanes + seed_off

    def emit_chunk(c):
        if use_hw_prng:
            bits1 = jax.lax.bitcast_convert_type(
                pltpu.prng_random_bits((chunk, lanes)), jnp.uint32)
            bits2 = jax.lax.bitcast_convert_type(
                pltpu.prng_random_bits((chunk, lanes)), jnp.uint32)
        else:
            off = scal_base + (c * chunk) * lanes
            base = jax.lax.bitcast_convert_type(local + off, jnp.uint32)
            bits1 = _lowbias32(base)
            bits2 = _lowbias32(base ^ jnp.uint32(0x68E31DA4))

        u1 = _bits_to_unit_float(bits1, ensure_nonzero=True)
        u2 = _bits_to_unit_float(bits2, ensure_nonzero=False)

        # Box-Muller, both outputs used: one log/sqrt/cos/sin per TWO samples.
        r = jnp.sqrt(jnp.float32(-2.0) * jnp.log(u1))
        theta = jnp.float32(_TWO_PI) * u2
        z0 = (r * jnp.cos(theta)).astype(out_ref.dtype)
        z1 = (r * jnp.sin(theta)).astype(out_ref.dtype)

        lo = c * chunk
        hi = half + c * chunk
        if not isinstance(c, int):
            lo = pl.multiple_of(lo, chunk)
            hi = pl.multiple_of(hi, chunk)
        out_ref[pl.ds(lo, chunk), :] = z0
        out_ref[pl.ds(hi, chunk), :] = z1

    if n_chunks == 1:
        emit_chunk(0)
    else:
        def body(c, carry):
            emit_chunk(c)
            return carry
        jax.lax.fori_loop(0, n_chunks, body, 0, unroll=True)


def _pallas_randn(batch_size: int, text_dim: int, seed: int = 0) -> jax.Array:
    """(batch_size, text_dim) float32 standard-normal tensor via a Pallas kernel."""
    total = batch_size * text_dim
    # Each 128-lane "uniform row" yields two output rows (cos + sin branches).
    half_rows = max(1, _cdiv(total, 2 * _LANES))
    # Round so generated rows are sublane-aligned (full unmasked vst).
    half_rows = _cdiv(half_rows, 8) * 8

    if half_rows > _TILE_CAP_HALF_ROWS:
        tile_half = _TILE_CAP_HALF_ROWS
    elif half_rows >= 2 * _CHUNK_ROWS:
        # Big-enough single-block case: split into >= 2 blocks so the
        # "parallel" grid axis can feed both v7x TensorCores.
        tile_half = _cdiv(_cdiv(half_rows, 2), _CHUNK_ROWS) * _CHUNK_ROWS
    else:
        tile_half = half_rows

    num_blocks = _cdiv(half_rows, tile_half)
    rows_gen = num_blocks * 2 * tile_half

    chunk = _CHUNK_ROWS if tile_half % _CHUNK_ROWS == 0 else tile_half
    n_chunks = tile_half // chunk

    use_hw_prng = jax.devices()[0].platform == "tpu"

    kernel = functools.partial(
        _randn_kernel,
        half=tile_half, chunk=chunk, n_chunks=n_chunks, use_hw_prng=use_hw_prng)

    seed_arr = jnp.asarray([seed], dtype=jnp.int32)
    gen = pl.pallas_call(
        kernel,
        out_shape=jax.ShapeDtypeStruct((rows_gen, _LANES), jnp.float32),
        grid=(num_blocks,),
        in_specs=[pl.BlockSpec(memory_space=pltpu.SMEM)],
        out_specs=pl.BlockSpec((2 * tile_half, _LANES), lambda b: (b, 0)),
        compiler_params=pltpu.CompilerParams(
            dimension_semantics=("parallel",)),  # shard blocks across v7x TCs
    )(seed_arr)

    flat = gen.reshape(-1)
    if total != rows_gen * _LANES:          # skip the slice when no padding
        flat = flat[:total]
    # Free row-major reshape back to the module's (batch, text_dim) layout.
    return flat.reshape(batch_size, text_dim)


class MockTextBertBase:
    """JAX/Pallas port of the PyTorch MockTextBertBase module."""

    def __init__(self, config):
        self.output_text_dim = config.get("text_dim", 32)
        text_name = config.get("text_name", "text")
        input_ids_suffix = config.get("text_input_ids_key", "input_ids")
        self.input_ids_key = f"{text_name}_processed_{input_ids_suffix}"
        # No learned parameters in the original module (forward returns randn).

    def forward(self, batch, seed: int = 0):
        # TODO(synk): torch.randn uses torch's global RNG state; here the seed
        # is passed explicitly (deterministic per (seed, shape)).
        batch_size = batch[self.input_ids_key].shape[0]
        return _pallas_randn(batch_size, self.output_text_dim, seed)


if __name__ == "__main__":
    key = jax.random.PRNGKey(0)

    # Small deterministic example inputs: batch=2, seq=8 token ids.
    input_ids = jax.random.randint(key, (2, 8), minval=0, maxval=1000, dtype=jnp.int32)
    batch = {"text_processed_input_ids": input_ids}

    model = MockTextBertBase({"text_dim": 32})
    out = model.forward(batch, seed=0)
    out = jax.block_until_ready(out)

    assert out.shape == (2, 32), out.shape
    assert out.dtype == jnp.float32, out.dtype
    assert bool(jnp.all(jnp.isfinite(out)))
    assert float(jnp.std(out)) > 0.1  # PRNG actually produced varied samples

    print("KERNEL_OK")
</pallas_src>

<mosaic_0001>
module attributes {stable_mosaic.version = 11 : i64} {
  func.func @_randn_kernel(%arg0: i32, %arg1: memref<1xi32, #tpu.memory_space<smem>>, %arg2: memref<16x128xf32, #tpu.memory_space<vmem>>) attributes {dimension_semantics = [#tpu.dimension_semantics<parallel>], iteration_bounds = array<i64: 1>, scalar_prefetch = 0 : i64, scratch_operands = 0 : i64, tpu.core_type = #tpu.core_type<tc>, window_params = [{transform_indices = @transform_0, window_bounds = array<i64: 1>}, {transform_indices = @transform_1, window_bounds = array<i64: 16, 128>}]} {
    %0 = tpu.iota {dimensions = array<i32: 0>} : vector<8x128xi32>
    %1 = tpu.iota {dimensions = array<i32: 1>} : vector<8x128xi32>
    %c7_i32 = arith.constant 7 : i32
    %2 = vector.broadcast %c7_i32 : i32 to vector<8x128xi32>
    %3 = arith.shli %0, %2 : vector<8x128xi32>
    %4 = arith.ori %3, %1 : vector<8x128xi32>
    %c0 = arith.constant 0 : index
    %5 = memref.load %arg1[%c0] : memref<1xi32, #tpu.memory_space<smem>>
    %c-1640531527_i32 = arith.constant -1640531527 : i32
    %6 = arith.muli %5, %c-1640531527_i32 : i32
    %c8_i32 = arith.constant 8 : i32
    %7 = arith.muli %arg0, %c8_i32 : i32
    %c128_i32 = arith.constant 128 : i32
    %8 = arith.muli %7, %c128_i32 : i32
    %9 = arith.addi %8, %6 : i32
    %c0_i32 = arith.constant 0 : i32
    %10 = arith.addi %9, %c0_i32 : i32
    %11 = vector.broadcast %10 : i32 to vector<8x128xi32>
    %12 = arith.addi %4, %11 : vector<8x128xi32>
    %13 = tpu.bitcast %12 : vector<8x128xi32> -> vector<8x128xi32>
    %c16_i32 = arith.constant 16 : i32
    %14 = vector.broadcast %c16_i32 : i32 to vector<8x128xi32>
    %15 = arith.shrui %13, %14 : vector<8x128xi32>
    %16 = arith.xori %13, %15 : vector<8x128xi32>
    %c2146121005_i32 = arith.constant 2146121005 : i32
    %17 = vector.broadcast %c2146121005_i32 : i32 to vector<8x128xi32>
    %18 = arith.muli %16, %17 : vector<8x128xi32>
    %c15_i32 = arith.constant 15 : i32
    %19 = vector.broadcast %c15_i32 : i32 to vector<8x128xi32>
    %20 = arith.shrui %18, %19 : vector<8x128xi32>
    %21 = arith.xori %18, %20 : vector<8x128xi32>
    %c-2073254261_i32 = arith.constant -2073254261 : i32
    %22 = vector.broadcast %c-2073254261_i32 : i32 to vector<8x128xi32>
    %23 = arith.muli %21, %22 : vector<8x128xi32>
    %c16_i32_0 = arith.constant 16 : i32
    %24 = vector.broadcast %c16_i32_0 : i32 to vector<8x128xi32>
    %25 = arith.shrui %23, %24 : vector<8x128xi32>
    %26 = arith.xori %23, %25 : vector<8x128xi32>
    %c1759714724_i32 = arith.constant 1759714724 : i32
    %27 = vector.broadcast %c1759714724_i32 : i32 to vector<8x128xi32>
    %28 = arith.xori %13, %27 : vector<8x128xi32>
    %c16_i32_1 = arith.constant 16 : i32
    %29 = vector.broadcast %c16_i32_1 : i32 to vector<8x128xi32>
    %30 = arith.shrui %28, %29 : vector<8x128xi32>
    %31 = arith.xori %28, %30 : vector<8x128xi32>
    %c2146121005_i32_2 = arith.constant 2146121005 : i32
    %32 = vector.broadcast %c2146121005_i32_2 : i32 to vector<8x128xi32>
    %33 = arith.muli %31, %32 : vector<8x128xi32>
    %c15_i32_3 = arith.constant 15 : i32
    %34 = vector.broadcast %c15_i32_3 : i32 to vector<8x128xi32>
    %35 = arith.shrui %33, %34 : vector<8x128xi32>
    %36 = arith.xori %33, %35 : vector<8x128xi32>
    %c-2073254261_i32_4 = arith.constant -2073254261 : i32
    %37 = vector.broadcast %c-2073254261_i32_4 : i32 to vector<8x128xi32>
    %38 = arith.muli %36, %37 : vector<8x128xi32>
    %c16_i32_5 = arith.constant 16 : i32
    %39 = vector.broadcast %c16_i32_5 : i32 to vector<8x128xi32>
    %40 = arith.shrui %38, %39 : vector<8x128xi32>
    %41 = arith.xori %38, %40 : vector<8x128xi32>
    %c9_i32 = arith.constant 9 : i32
    %42 = vector.broadcast %c9_i32 : i32 to vector<8x128xi32>
    %43 = arith.shrui %26, %42 : vector<8x128xi32>
    %c1_i32 = arith.constant 1 : i32
    %44 = vector.broadcast %c1_i32 : i32 to vector<8x128xi32>
    %45 = arith.ori %43, %44 : vector<8x128xi32>
    %c1065353216_i32 = arith.constant 1065353216 : i32
    %46 = vector.broadcast %c1065353216_i32 : i32 to vector<8x128xi32>
    %47 = arith.ori %45, %46 : vector<8x128xi32>
    %48 = tpu.bitcast %47 : vector<8x128xi32> -> vector<8x128xf32>
    %cst = arith.constant 1.000000e+00 : f32
    %49 = vector.broadcast %cst : f32 to vector<8x128xf32>
    %50 = arith.subf %48, %49 : vector<8x128xf32>
    %c9_i32_6 = arith.constant 9 : i32
    %51 = vector.broadcast %c9_i32_6 : i32 to vector<8x128xi32>
    %52 = arith.shrui %41, %51 : vector<8x128xi32>
    %c1065353216_i32_7 = arith.constant 1065353216 : i32
    %53 = vector.broadcast %c1065353216_i32_7 : i32 to vector<8x128xi32>
    %54 = arith.ori %52, %53 : vector<8x128xi32>
    %55 = tpu.bitcast %54 : vector<8x128xi32> -> vector<8x128xf32>
    %cst_8 = arith.constant 1.000000e+00 : f32
    %56 = vector.broadcast %cst_8 : f32 to vector<8x128xf32>
    %57 = arith.subf %55, %56 : vector<8x128xf32>
    %58 = math.log %50 : vector<8x128xf32>
    %cst_9 = arith.constant -2.000000e+00 : f32
    %59 = vector.broadcast %cst_9 : f32 to vector<8x128xf32>
    %60 = arith.mulf %59, %58 : vector<8x128xf32>
    %61 = math.sqrt %60 : vector<8x128xf32>
    %cst_10 = arith.constant 6.28318548 : f32
    %62 = vector.broadcast %cst_10 : f32 to vector<8x128xf32>
    %63 = arith.mulf %62, %57 : vector<8x128xf32>
    %64 = math.cos %63 : vector<8x128xf32>
    %65 = arith.mulf %61, %64 : vector<8x128xf32>
    %66 = math.sin %63 : vector<8x128xf32>
    %67 = arith.mulf %61, %66 : vector<8x128xf32>
    %c0_11 = arith.constant 0 : index
    %c0_12 = arith.constant 0 : index
    %68 = vector.load %arg2[%c0_11, %c0_12] : memref<16x128xf32, #tpu.memory_space<vmem>>, vector<8x128xf32>
    tpu.vector_store %arg2[%c0_11, %c0_12], %65 {strides = array<i32>} : memref<16x128xf32, #tpu.memory_space<vmem>>, vector<8x128xf32>,
    %c8 = arith.constant 8 : index
    %c0_13 = arith.constant 0 : index
    %69 = vector.load %arg2[%c8, %c0_13] : memref<16x128xf32, #tpu.memory_space<vmem>>, vector<8x128xf32>
    tpu.vector_store %arg2[%c8, %c0_13], %67 {strides = array<i32>} : memref<16x128xf32, #tpu.memory_space<vmem>>, vector<8x128xf32>,
    return
  }
  func.func @transform_0(%arg0: i32) -> i32 {
    %c0_i32 = arith.constant 0 : i32
    %c0_i32_0 = arith.constant 0 : i32
    return %c0_i32 : i32
  }
  func.func @transform_1(%arg0: i32) -> (i32, i32) {
    %c0_i32 = arith.constant 0 : i32
    %c0_i32_0 = arith.constant 0 : i32
    return %arg0, %c0_i32 : i32, i32
  }
}

</mosaic_0001>

<bundles_post_ra>
// kernel: tpu_custom_call.1
= control target key start
LH: loop header
LB: loop body
LE: loop exit
PB: predicated region body
PF: predicated region fallthrough
CT: control target
= control target key end

     0   :  { %v10_v0 = vlaneseq  ;;  %s396_s0 = inlined_call_operand.<no memory space> [shape: s32[1], index: 0, kind: input, shape index: {}]   ;;  %s397_s1 = inlined_call_operand.hbm [shape: f32[16,128], index: 1, kind: output, shape index: {}]  }
   0x1   :  { %s17_s8 = smul.u32 2654435769, %s396_s0 }
   0x2   :  { %v11_v1 = vshrl.u32 %v10_v0, 7  ;;  %v13_v2 = vand.u32 127, %v10_v0 }
   0x3   :  { %7 = vsyncpa [#allocation4], 0  ;;  %v20_v4 = vstv %s17_s8  ;;  %v341_v38 = vmov 683565275   ;;  %v342_v40 = vmov 2475754826  }
   0x4   :  { %v14_v3 = vshll.u32 %v11_v1, 7  ;;  %v343_v42 = vmov 2131351028   ;;  %v344_v49 = vmov 2102212464   ;;  %s347_s0 = smov [#allocation3]  }
   0x5   :  { %v345_v52 = vmov 920167782   ;;  %v346_v55 = vmov 1326507024   ;;  %s275_s9 = sshll.u32 %s347_s0, 4  ;;  %s276_s9 = int_to_ptr.vmem [resolvable:$true] %s275_s9 }
   0x6   :  { %v15_v5 = vor.u32 %v14_v3, %v13_v2  ;;  %s317_s10 = scalar_lea.vmem %s276_s9, 256  ;;  %p322_p1 = scmp.lt.s32.totalorder %s276_s9, %s276_s9 }
   0x7   :  { %p318_p0 = scmp.ne.s32.totalorder %s276_s9, %s317_s10  ;;  %p323_p2 = scmp.lt.s32.totalorder %s317_s10, %s317_s10 }
   0x8   :  { %v21_v6 = vadd.s32 %v20_v4, %v15_v5 }
   0x9   :  { %p324_p3 = por %p323_p2, %p322_p1 }
   0xa   :  { %v30_v7 = vxor.u32 1759714724, %v21_v6  ;;  %v22_v13 = vshrl.u32 %v21_v6, 16 }
   0xb   :  { %p325_p4 = pnand %p324_p3, %p318_p0 }
   0xc   :  { %v31_v8 = vshrl.u32 %v30_v7, 16  ;;  %v23_v16 = vxor.u32 %v22_v13, %v21_v6 }
   0xe   :  { %v32_v9 = vxor.u32 %v31_v8, %v30_v7  ;;  %v24_v19 = vmul.u32 2146121005, %v23_v16 }
  0x10   :  { %v33_v10 = vmul.u32 2146121005, %v32_v9  ;;  %v25_v22 = vshrl.u32 %v24_v19, 15 }
  0x12   :  { %v34_v11 = vshrl.u32 %v33_v10, 15  ;;  %v26_v25 = vxor.u32 %v25_v22, %v24_v19 }
  0x14   :  { %v35_v12 = vxor.u32 %v34_v11, %v33_v10  ;;  %v27_v29 = vmul.u32 2221713035, %v26_v25 }
  0x16   :  { %v36_v14 = vmul.u32 2221713035, %v35_v12  ;;  %v28_v32 = vshrl.u32 %v27_v29, 16 }
  0x18   :  { %v37_v15 = vshrl.u32 %v36_v14, 16  ;;  %v29_v44 = vxor.u32 %v28_v32, %v27_v29 }
  0x1a   :  { %v38_v17 = vxor.u32 %v37_v15, %v36_v14  ;;  %v39_v7 = vshrl.u32 %v29_v44, 9 }
  0x1c   :  { %v44_v18 = vshrl.u32 %v38_v17, 9  ;;  %v40_v16 = vor.u32 1, %v39_v7 }
  0x1e   :  { %v45_v20 = vor.u32 1065353216, %v44_v18 }
  0x20   :  { %v287_v21 = vadd.f32 -1.0, %v45_v20  ;;  %v41_v20 = vor.u32 1065353216, %v40_v16 }
  0x22   :  { %v363_v23 = vmul.f32 6.2831855, %v287_v21 }
  0x24   :  { %v62_v24 = vand.u32 2139095040, %v363_v23  ;;  %v59_v26 = vand.u32 2147483647, %v363_v23  ;;  %vm61_vm7 = vcmp.lt.s32.totalorder %v363_v23, 0 }
  0x26   :  { %v63_v27 = vshrl.u32 %v62_v24, 23  ;;  %v66_v30 = vand.u32 8388607, %v59_v26  ;;  %v286_v24 = vadd.f32 -1.0, %v41_v20  ;;  %vm60_vm8 = vcmp.le.f32.partialorder %v59_v26, 0.7853982 }
  0x28   :  { %v288_v28 = vadd.s32 4294967169, %v63_v27  ;;  %v67_v33 = vor.u32 8388608, %v66_v30  ;;  %309 = vlog2.f32 %v286_v24 }
  0x2a   :  { %v69_v31 = vadd.s32 1, %v288_v28  ;;  %v107_v45 = vshll.u32 %v67_v33, 8 }
  0x2c   :  { %vm70_vm0 = vcmp.gt.s32.totalorder %v69_v31, 0 }
  0x2d   :  { %v71_v34 = vsel %vm70_vm0, %v69_v31, 0 }
  0x2e   :  { %v73_v35 = vand.u32 31, %v71_v34  ;;  %v72_v36 = vshrl.u32 %v71_v34, 5 }
  0x30   :  { %v74_v37 = vsub.s32 32, %v73_v35  ;;  %v76_v39 = vshll.u32 %v341_v38, %v73_v35  ;;  %v79_v41 = vshll.u32 %v342_v40, %v73_v35  ;;  %v82_v43 = vshll.u32 %v343_v42, %v73_v35 }
  0x31   :  { %v85_v51 = vshll.u32 %v344_v49, %v73_v35  ;;  %v88_v54 = vshll.u32 %v345_v52, %v73_v35  ;;  %vm91_vm1 = vcmp.lt.s32.totalorder %v72_v36, 1  ;;  %vm92_vm2 = vcmp.lt.s32.totalorder %v72_v36, 2 }
  0x32   :  { %v75_v46 = vshrl.u32 %v341_v38, %v74_v37  ;;  %v77_v47 = vshrl.u32 %v342_v40, %v74_v37  ;;  %v80_v48 = vshrl.u32 %v343_v42, %v74_v37  ;;  %v83_v50 = vshrl.u32 %v344_v49, %v74_v37  ;;  %v310_v33 = vpop.eup %309 }
  0x33   :  { %v86_v53 = vshrl.u32 %v345_v52, %v74_v37  ;;  %v89_v56 = vshrl.u32 %v346_v55, %v74_v37  ;;  %vm93_vm3 = vcmp.lt.s32.totalorder %v72_v36, 3  ;;  %vm94_vm4 = vcmp.lt.s32.totalorder %v72_v36, 4 }
  0x34   :  { %v78_v57 = vor.u32 %v77_v47, %v76_v39  ;;  %v81_v58 = vor.u32 %v80_v48, %v79_v41  ;;  %v84_v59 = vor.u32 %v83_v50, %v82_v43  ;;  %v49_v38 = vmul.f32 0.6931472, %v310_v33 }
  0x35   :  { %v87_v60 = vor.u32 %v86_v53, %v85_v51  ;;  %v90_v61 = vor.u32 %v89_v56, %v88_v54 }
  0x36   :  { %v95_v62 = vsel %vm91_vm1, %v75_v46, %v78_v57  ;;  %v99_v63 = vsel %vm91_vm1, %v78_v57, %v81_v58  ;;  %v103_v0 = vsel %vm91_vm1, %v81_v58, %v84_v59  ;;  %v96_v1 = vsel %vm94_vm4, %v84_v59, 2102212464 }
  0x37   :  { %v100_v2 = vsel %vm94_vm4, %v87_v60, 920167782  ;;  %v104_v3 = vsel %vm94_vm4, %v90_v61, 1326507024  ;;  %v97_v4 = vsel %vm93_vm3, %v81_v58, %v96_v1  ;;  %v50_v43 = vmul.f32 -2.0, %v49_v38 }
  0x38   :  { %v101_v5 = vsel %vm93_vm3, %v84_v59, %v100_v2  ;;  %v105_v6 = vsel %vm93_vm3, %v87_v60, %v104_v3  ;;  %v98_v8 = vsel %vm92_vm2, %v95_v62, %v97_v4  ;;  %vm151_vm1 = vweird.f32 %v363_v23 }
  0x39   :  { %v102_v9 = vsel %vm92_vm2, %v99_v63, %v101_v5  ;;  %v106_v10 = vsel %vm92_vm2, %v103_v0, %v105_v6  ;;  %v114_v15 = vmul.u32 %v107_v45, %v98_v8  ;;  %311 = vrsqrt.f32 %v50_v43 }
  0x3a   :  { %v369_v11 = vmul.u32.u64.low %v107_v45, %v106_v10  ;;  %v370_v12 = vmul.u32.u64.high %v107_v45, %v106_v10, %v369_v11  ;;  %v372_v13 = vmul.u32.u64.low %v107_v45, %v102_v9  ;;  %v373_v14 = vmul.u32.u64.high %v107_v45, %v102_v9, %v372_v13 }
  0x3b   :  { %vm53_vm9 = vcmp.eq.f32.partialorder %v50_v43, inf  ;;  %vm55_vm10 = vcmp.eq.f32.partialorder %v50_v43, 0.0  ;;  %v56_v60 = vand.u32 2147483648, %v50_v43 }
  0x3c   :  { %vm116_vm5 = vc.u32 %v370_v12, %v372_v13  ;;  %v117_v17 = vadd.s32 1, %v373_v14  ;;  %v115_v32 = vadd.s32 %v372_v13, %v370_v12 }
  0x3e   :  { %v118_v18 = vsel %vm116_vm5, %v117_v17, %v373_v14 }
  0x3f   :  { %v119_v19 = vadd.s32 %v118_v18, %v114_v15 }
  0x41   :  { %v120_v21 = vadd.s32 536870912, %v119_v19 }
  0x43   :  { %v121_v22 = vshrl.u32 %v120_v21, 30  ;;  %v312_v55 = vpop.eup %311 }
  0x44   :  { %v52_v58 = vmul.f32 %v312_v55, %v50_v43 }
  0x45   :  { %v122_v25 = vshll.u32 %v121_v22, 30  ;;  %v145_v47 = vsub.s32 4, %v121_v22 }
  0x46   :  { %v54_v61 = vsel %vm53_vm9, %v50_v43, %v52_v58 }
  0x47   :  { %v123_v27 = vsub.s32 %v119_v19, %v122_v25  ;;  %v146_v50 = vsel %vm61_vm7, %v145_v47, %v121_v22  ;;  %v57_v2 = vsel %vm55_vm10, %v56_v60, %v54_v61 }
  0x48   :  { %v148_v53 = vsel %vm60_vm8, 0, %v146_v50 }
  0x49   :  { %v125_v28 = vsub.s32 0, %v123_v27  ;;  %v256_v54 = vadd.s32 3, %v148_v53  ;;  %v152_v56 = vand.u32 3, %v148_v53 }
  0x4b   :  { %v289_v29 = vmin.u32 %v125_v28, %v123_v27  ;;  %v257_v57 = vand.u32 3, %v256_v54  ;;  %vm157_vm11 = vcmp.eq.s32.totalorder %v152_v56, 2  ;;  %vm154_vm13 = vcmp.eq.s32.totalorder %v152_v56, 0 }
  0x4c   :  { %vm153_vm15 = vcmp.lt.s32.totalorder %v152_v56, 2 }
  0x4d   :  { %v127_v30 = vclz %v289_v29  ;;  %vm262_vm12 = vcmp.eq.s32.totalorder %v257_v57, 2  ;;  %vm259_vm14 = vcmp.eq.s32.totalorder %v257_v57, 0  ;;  %vm258_vm0 = vcmp.lt.s32.totalorder %v257_v57, 2 }
  0x4f   :  { %v290_v31 = vadd.s32 4294967294, %v127_v30 }
  0x51   :  { %vm291_vm6 = vcmp.lt.s32.totalorder %v290_v31, 0 }
  0x52   :  { %v130_v34 = vsel %vm291_vm6, 0, %v290_v31 }
  0x53   :  { %v131_v35 = vsub.s32 32, %v130_v34  ;;  %v132_v36 = vshll.u32 %v123_v27, %v130_v34  ;;  %v135_v37 = vsub.s32 4294967266, %v130_v34 }
  0x55   :  { %v133_v39 = vshrl.u32 %v115_v32, %v131_v35  ;;  %v136_v40 = vadd.s32 127, %v135_v37 }
  0x57   :  { %v134_v41 = vor.u32 %v133_v39, %v132_v36  ;;  %v137_v42 = vshll.u32 %v136_v40, 23 }
  0x59   :  { %v138_v44 = vor.u32 4788187, %v137_v42  ;;  %v141_v45 = vcvt.s32.f32 %v134_v41 }
  0x5b   :  { %v139_v46 = vand.u32 2147483647, %v138_v44 }
  0x5d   :  { %v142_v48 = vmul.f32 %v141_v45, %v139_v46 }
  0x5f   :  { %v143_v49 = vxor.u32 2147483648, %v142_v48 }
  0x61   :  { %v144_v51 = vsel %vm61_vm7, %v143_v49, %v142_v48 }
  0x62   :  { %v147_v52 = vsel %vm60_vm8, %v363_v23, %v144_v51 }
  0x63   :  { %313 = vcosq.f32 %v147_v52 }
  0x64   :  { %315 = vsinq.f32 %v147_v52 }
  0x6d   :  { %v314_v59 = vpop.eup %313 }
  0x6e   :  { %v316_v26 = vpop.eup %315  ;;  %v158_v62 = vxor.u32 2147483648, %v314_v59 }
  0x6f   :  { %v155_v63 = vxor.u32 2147483648, %v316_v26 }
  0x70   :  { %v159_v0 = vsel %vm157_vm11, %v158_v62, %v316_v26  ;;  %v264_v1 = vsel %vm262_vm12, %v158_v62, %v316_v26 }
  0x71   :  { %v156_v3 = vsel %vm154_vm13, %v314_v59, %v155_v63  ;;  %v261_v4 = vsel %vm259_vm14, %v314_v59, %v155_v63 }
  0x72   :  { %v160_v5 = vsel %vm153_vm15, %v156_v3, %v159_v0  ;;  %v265_v6 = vsel %vm258_vm0, %v261_v4, %v264_v1 }
  0x73   :  { %v161_v7 = vsel %vm151_vm1, nan, %v160_v5  ;;  %v266_v8 = vsel %vm151_vm1, nan, %v265_v6 }
  0x74   :  { %v162_v9 = vmul.f32 %v161_v7, %v57_v2  ;;  %v267_v10 = vmul.f32 %v266_v8, %v57_v2 }
  0x76   :  { %268 = vst [vmem:[#allocation3] sm:$0xff] %v162_v9  ;;  %269 = vst [vmem:[#allocation3 + $0x8] sm:$0xff] %v267_v10 }
  0x77   :  { %328 = shalt.err (!%p325_p4)
}
  0x78   :  { %s329_s13 = scalar_lea.hbm %s397_s1, 256 }
  0x79   :  { %p330_p5 = scmp.ne.s32.totalorder %s397_s1, %s329_s13  ;;  %p333_p6 = scmp.lt.u32.totalorder %s329_s13, %s397_s1 }
  0x7b   :  { %p335_p7 = pnand %p333_p6, %p330_p5 }
  0x7d   :  { %338 = shalt.err (!%p335_p7)
}
  0x7e   :  { %s348_s18 = smov 128   ;;  %s349_s19 = smov 8  }
  0x7f   :  { %281 = dma.vmem_to_hbm [thread:$0]  %s276_s9, 256, %s397_s1, [#allocation4], %s348_s18, %s348_s18, %s349_s19  }
  0x80   :  { %339 = dma.done.wait [#allocation4], 256  }
  0x81   :  { %340 = vsyncadd [#allocation4], 4294967040 }
  0x82   :  { %285 = vsyncpa [#allocation4], 1 }

</bundles_post_ra>
